<compile_context>
chip_gen: v7x
topology: tpu7x:2x2x1
jax: 0.10.0
libtpu: 0.0.40
codegen_flags: <defaults>
</compile_context>

<pallas_src>
import jax
import jax.numpy as jnp
from jax.experimental import pallas as pl
from jax.experimental.pallas import tpu as pltpu


_INV_SQRT2 = 0.7071067811865476


def _geglu_kernel(x_ref, wh_ref, wg_ref, b_ref, o_ref, acc_h, acc_g):
    # x_ref: (tm, tk); wh/wg: (tk, tn); b_ref: (2, tn); o_ref: (tm, tn)
    k = pl.program_id(2)

    x = x_ref[...]
    ph = jnp.dot(x, wh_ref[...], preferred_element_type=jnp.float32)
    pg = jnp.dot(x, wg_ref[...], preferred_element_type=jnp.float32)

    @pl.when(k == 0)
    def _():
        acc_h[...] = ph
        acc_g[...] = pg

    @pl.when(k > 0)
    def _():
        acc_h[...] += ph
        acc_g[...] += pg

    @pl.when(k == pl.num_programs(2) - 1)
    def _():
        bh = b_ref[0:1, :].astype(jnp.float32)   # hidden bias row
        bg = b_ref[1:2, :].astype(jnp.float32)   # gate bias row
        h = acc_h[...] + bh
        g = acc_g[...] + bg
        # exact gelu: 0.5 * g * (1 + erf(g / sqrt(2)))  (f32 epilogue)
        gelu_g = 0.5 * g * (1.0 + jax.lax.erf(g * _INV_SQRT2))
        o_ref[...] = (h * gelu_g).astype(o_ref.dtype)


def _round_up(a, b):
    return (a + b - 1) // b * b


def _chip_config():
    """(tm, tn, tk, vmem_limit_bytes) per TPU generation."""
    kind = ""
    try:
        kind = jax.devices()[0].device_kind.lower()
    except Exception:
        pass
    if "v6" in kind:
        # 128 MiB VMEM, ridge ~670 FLOP/byte -> big tiles, raise scoped limit.
        return 1024, 1024, 512, 96 << 20
    if "v5" in kind:
        # v5e scoped default ~16 MiB; 512 tiles cross the ~240 FLOP/byte ridge.
        return 512, 512, 512, 64 << 20
    if "v7" in kind or "7x" in kind:
        # 64 MiB physical / 32 MiB scoped per TC -> stay well under.
        return 1024, 1024, 512, 48 << 20
    # Unknown generation: conservative middle ground.
    return 512, 1024, 512, 64 << 20


def _pick_divisor_tile(padded_dim, max_tile, align=128):
    """Largest multiple of `align` <= max_tile that divides padded_dim."""
    best = align
    t = align
    while t <= max_tile:
        if padded_dim % t == 0:
            best = t
        t += align
    return best


def geglu(x, weight, bias=None, *, tm=None, tn=None, tk=None,
          vmem_limit_bytes=None, compute_dtype=None):
    """GEGLU forward.

    x: (..., dim_in); weight: (dim_in, 2*dim_out); bias: (2*dim_out,) or None.
    Returns (..., dim_out).  compute_dtype=jnp.bfloat16 optionally casts the
    matmul operands (f32 accumulation + epilogue are kept regardless).
    """
    *lead, dim_in = x.shape
    assert weight.shape[0] == dim_in
    dim_out = weight.shape[1] // 2

    d_tm, d_tn, d_tk, d_vmem = _chip_config()
    tm = d_tm if tm is None else tm
    tn = d_tn if tn is None else tn
    tk = d_tk if tk is None else tk
    vmem_limit_bytes = d_vmem if vmem_limit_bytes is None else vmem_limit_bytes

    M = 1
    for d in lead:
        M *= d
    x2d = x.reshape(M, dim_in)

    if compute_dtype is not None:
        x2d = x2d.astype(compute_dtype)
        weight = weight.astype(compute_dtype)

    if bias is None:
        bias = jnp.zeros((2 * dim_out,), dtype=weight.dtype)

    # ---- K tiling: pick tk so that Kp == round_up(dim_in, 128) exactly ----
    if dim_in <= tk:
        tk_eff, Kp = dim_in, dim_in          # single full-K block, never padded
    else:
        Kp = _round_up(dim_in, 128)
        tk_eff = _pick_divisor_tile(Kp, tk)

    # ---- N tiling: Np == round_up(dim_out, 128), tn divides Np ----
    Np = _round_up(dim_out, 128)
    tn_eff = _pick_divisor_tile(Np, tn)

    # ---- M tiling ----
    tm_eff = min(tm, _round_up(M, 8))
    Mp = _round_up(M, tm_eff)

    # Pad the token matrix only if needed (zero rows/cols contribute nothing).
    if (Mp, Kp) != (M, dim_in):
        x2d = jnp.pad(x2d, ((0, Mp - M), (0, Kp - dim_in)))

    # Weight layout: in the aligned production case the original weight array
    # is passed straight through and the hidden/gate halves are addressed in
    # place via the column-block offset in the index_maps (no HBM copy).
    if (Kp, Np) != (dim_in, dim_out):
        # TODO(synk): cache this re-layout outside the hot path if the padded
        # branch is ever hit with production dims.
        w_p = jnp.zeros((Kp, 2 * Np), dtype=weight.dtype)
        w_p = w_p.at[:dim_in, :dim_out].set(weight[:, :dim_out])
        w_p = w_p.at[:dim_in, Np:Np + dim_out].set(weight[:, dim_out:])
    else:
        w_p = weight

    # Combined bias: row 0 = hidden half, row 1 = gate half (tiny per-call op).
    b_p = jnp.zeros((2, Np), dtype=bias.dtype)
    b_p = b_p.at[0, :dim_out].set(bias[:dim_out])
    b_p = b_p.at[1, :dim_out].set(bias[dim_out:])

    gate_blk = Np // tn_eff                 # column-block offset of the gate half
    grid = (Mp // tm_eff, Np // tn_eff, Kp // tk_eff)

    out2d = pl.pallas_call(
        _geglu_kernel,
        out_shape=jax.ShapeDtypeStruct((Mp, Np), x.dtype),
        grid_spec=pltpu.PrefetchScalarGridSpec(
            num_scalar_prefetch=0,
            grid=grid,
            in_specs=[
                # token rows
                pl.BlockSpec((tm_eff, tk_eff), lambda i, j, k: (i, k)),
                # W hidden half (same HBM array, column blocks [0, Np))
                pl.BlockSpec((tk_eff, tn_eff), lambda i, j, k: (k, j)),
                # W gate half  (same HBM array, column blocks [Np, 2Np))
                pl.BlockSpec((tk_eff, tn_eff),
                             lambda i, j, k: (k, gate_blk + j)),
                # combined bias; block index independent of k -> fetched once
                # per output tile, not per grid step.
                pl.BlockSpec((2, tn_eff), lambda i, j, k: (0, j)),
            ],
            out_specs=pl.BlockSpec((tm_eff, tn_eff), lambda i, j, k: (i, j)),
            scratch_shapes=[
                pltpu.VMEM((tm_eff, tn_eff), jnp.float32),  # hidden accumulator
                pltpu.VMEM((tm_eff, tn_eff), jnp.float32),  # gate accumulator
            ],
        ),
        compiler_params=pltpu.CompilerParams(
            dimension_semantics=("parallel", "parallel", "arbitrary"),
            vmem_limit_bytes=vmem_limit_bytes,
        ),
    )(x2d, w_p, w_p, b_p)

    return out2d[:M, :dim_out].reshape(*lead, dim_out)


if __name__ == "__main__":
    # Small shapes consistent with GEGLU(dim_in=32, dim_out=32) on (batch, seq, dim_in).
    batch, seq, dim_in, dim_out = 2, 8, 32, 32

    key = jax.random.PRNGKey(0)
    kx, kw, kb = jax.random.split(key, 3)

    x = jax.random.normal(kx, (batch, seq, dim_in), dtype=jnp.float32)
    weight = jax.random.normal(kw, (dim_in, 2 * dim_out), dtype=jnp.float32) * 0.05
    bias = jax.random.normal(kb, (2 * dim_out,), dtype=jnp.float32) * 0.05

    out = jax.block_until_ready(geglu(x, weight, bias))

    # Pure-JAX reference (exact erf gelu, matching F.gelu default).
    proj = x.reshape(-1, dim_in) @ weight + bias
    h_ref, g_ref = proj[:, :dim_out], proj[:, dim_out:]
    ref = h_ref * (0.5 * g_ref * (1.0 + jax.lax.erf(g_ref / jnp.sqrt(2.0))))
    ref = ref.reshape(batch, seq, dim_out)
    err = float(jnp.max(jnp.abs(out - ref)))
    assert jnp.allclose(out, ref, atol=1e-5, rtol=1e-5), err

    print("KERNEL_OK")
</pallas_src>

<mosaic_0001>
module attributes {stable_mosaic.version = 11 : i64} {
  func.func @_geglu_kernel(%arg0: i32, %arg1: i32, %arg2: i32, %arg3: memref<16x32xf32, #tpu.memory_space<vmem>>, %arg4: memref<32x128xf32, #tpu.memory_space<vmem>>, %arg5: memref<32x128xf32, #tpu.memory_space<vmem>>, %arg6: memref<2x128xf32, #tpu.memory_space<vmem>>, %arg7: memref<16x128xf32, #tpu.memory_space<vmem>>, %arg8: memref<16x128xf32, #tpu.memory_space<vmem>>, %arg9: memref<16x128xf32, #tpu.memory_space<vmem>>) attributes {dimension_semantics = [#tpu.dimension_semantics<parallel>, #tpu.dimension_semantics<parallel>, #tpu.dimension_semantics<arbitrary>], iteration_bounds = array<i64: 1, 1, 1>, scalar_prefetch = 0 : i64, scratch_operands = 2 : i64, tpu.core_type = #tpu.core_type<tc>, window_params = [{transform_indices = @transform_0, window_bounds = array<i64: 16, 32>}, {transform_indices = @transform_1, window_bounds = array<i64: 32, 128>}, {transform_indices = @transform_2, window_bounds = array<i64: 32, 128>}, {transform_indices = @transform_3, window_bounds = array<i64: 2, 128>}, {transform_indices = @transform_4, window_bounds = array<i64: 16, 128>}]} {
    %c0 = arith.constant 0 : index
    %c0_0 = arith.constant 0 : index
    %0 = vector.load %arg3[%c0, %c0_0] : memref<16x32xf32, #tpu.memory_space<vmem>>, vector<16x32xf32>
    %c0_1 = arith.constant 0 : index
    %c0_2 = arith.constant 0 : index
    %1 = vector.load %arg4[%c0_1, %c0_2] : memref<32x128xf32, #tpu.memory_space<vmem>>, vector<32x128xf32>
    %cst = arith.constant dense<0.000000e+00> : vector<16x128xf32>
    %2 = tpu.matmul %0, %1, %cst {dimension_numbers = #tpu.dot_dimension_numbers<[1], [0], [0], [1], [0, 0, 1, 1], [], []>} : vector<16x32xf32>, vector<32x128xf32>, vector<16x128xf32> -> vector<16x128xf32>
    %c0_3 = arith.constant 0 : index
    %c0_4 = arith.constant 0 : index
    %3 = vector.load %arg5[%c0_3, %c0_4] : memref<32x128xf32, #tpu.memory_space<vmem>>, vector<32x128xf32>
    %cst_5 = arith.constant dense<0.000000e+00> : vector<16x128xf32>
    %4 = tpu.matmul %0, %3, %cst_5 {dimension_numbers = #tpu.dot_dimension_numbers<[1], [0], [0], [1], [0, 0, 1, 1], [], []>} : vector<16x32xf32>, vector<32x128xf32>, vector<16x128xf32> -> vector<16x128xf32>
    %c0_i32 = arith.constant 0 : i32
    %5 = arith.cmpi eq, %arg2, %c0_i32 : i32
    %6 = arith.extui %5 : i1 to i32
    %c0_i32_6 = arith.constant 0 : i32
    %7 = arith.cmpi ne, %6, %c0_i32_6 : i32
    scf.if %7 {
      %c0_11 = arith.constant 0 : index
      %c0_12 = arith.constant 0 : index
      %14 = vector.load %arg8[%c0_11, %c0_12] : memref<16x128xf32, #tpu.memory_space<vmem>>, vector<16x128xf32>
      tpu.vector_store %arg8[%c0_11, %c0_12], %2 {strides = array<i32>} : memref<16x128xf32, #tpu.memory_space<vmem>>, vector<16x128xf32>,
      %c0_13 = arith.constant 0 : index
      %c0_14 = arith.constant 0 : index
      %15 = vector.load %arg9[%c0_13, %c0_14] : memref<16x128xf32, #tpu.memory_space<vmem>>, vector<16x128xf32>
      tpu.vector_store %arg9[%c0_13, %c0_14], %4 {strides = array<i32>} : memref<16x128xf32, #tpu.memory_space<vmem>>, vector<16x128xf32>,
    } else {
    }
    %c0_i32_7 = arith.constant 0 : i32
    %8 = arith.cmpi sgt, %arg2, %c0_i32_7 : i32
    %9 = arith.extui %8 : i1 to i32
    %c0_i32_8 = arith.constant 0 : i32
    %10 = arith.cmpi ne, %9, %c0_i32_8 : i32
    scf.if %10 {
      %c0_11 = arith.constant 0 : index
      %c0_12 = arith.constant 0 : index
      %14 = vector.load %arg8[%c0_11, %c0_12] : memref<16x128xf32, #tpu.memory_space<vmem>>, vector<16x128xf32>
      %15 = arith.addf %14, %2 : vector<16x128xf32>
      %c0_13 = arith.constant 0 : index
      %c0_14 = arith.constant 0 : index
      %16 = vector.load %arg8[%c0_13, %c0_14] : memref<16x128xf32, #tpu.memory_space<vmem>>, vector<16x128xf32>
      tpu.vector_store %arg8[%c0_13, %c0_14], %15 {strides = array<i32>} : memref<16x128xf32, #tpu.memory_space<vmem>>, vector<16x128xf32>,
      %c0_15 = arith.constant 0 : index
      %c0_16 = arith.constant 0 : index
      %17 = vector.load %arg9[%c0_15, %c0_16] : memref<16x128xf32, #tpu.memory_space<vmem>>, vector<16x128xf32>
      %18 = arith.addf %17, %4 : vector<16x128xf32>
      %c0_17 = arith.constant 0 : index
      %c0_18 = arith.constant 0 : index
      %19 = vector.load %arg9[%c0_17, %c0_18] : memref<16x128xf32, #tpu.memory_space<vmem>>, vector<16x128xf32>
      tpu.vector_store %arg9[%c0_17, %c0_18], %18 {strides = array<i32>} : memref<16x128xf32, #tpu.memory_space<vmem>>, vector<16x128xf32>,
    } else {
    }
    %c0_i32_9 = arith.constant 0 : i32
    %11 = arith.cmpi eq, %arg2, %c0_i32_9 : i32
    %12 = arith.extui %11 : i1 to i32
    %c0_i32_10 = arith.constant 0 : i32
    %13 = arith.cmpi ne, %12, %c0_i32_10 : i32
    scf.if %13 {
      %c0_11 = arith.constant 0 : index
      %c0_12 = arith.constant 0 : index
      %14 = vector.load %arg6[%c0_11, %c0_12] : memref<2x128xf32, #tpu.memory_space<vmem>>, vector<1x128xf32>
      %c1 = arith.constant 1 : index
      %c0_13 = arith.constant 0 : index
      %15 = vector.load %arg6[%c1, %c0_13] : memref<2x128xf32, #tpu.memory_space<vmem>>, vector<1x128xf32>
      %c0_14 = arith.constant 0 : index
      %c0_15 = arith.constant 0 : index
      %16 = vector.load %arg8[%c0_14, %c0_15] : memref<16x128xf32, #tpu.memory_space<vmem>>, vector<16x128xf32>
      %17 = vector.broadcast %14 : vector<1x128xf32> to vector<16x128xf32>
      %18 = arith.addf %16, %17 : vector<16x128xf32>
      %c0_16 = arith.constant 0 : index
      %c0_17 = arith.constant 0 : index
      %19 = vector.load %arg9[%c0_16, %c0_17] : memref<16x128xf32, #tpu.memory_space<vmem>>, vector<16x128xf32>
      %20 = vector.broadcast %15 : vector<1x128xf32> to vector<16x128xf32>
      %21 = arith.addf %19, %20 : vector<16x128xf32>
      %cst_18 = arith.constant 5.000000e-01 : f32
      %22 = vector.broadcast %cst_18 : f32 to vector<16x128xf32>
      %23 = arith.mulf %22, %21 : vector<16x128xf32>
      %cst_19 = arith.constant 0.707106769 : f32
      %24 = vector.broadcast %cst_19 : f32 to vector<16x128xf32>
      %25 = arith.mulf %21, %24 : vector<16x128xf32>
      %26 = math.erf %25 : vector<16x128xf32>
      %cst_20 = arith.constant 1.000000e+00 : f32
      %27 = vector.broadcast %cst_20 : f32 to vector<16x128xf32>
      %28 = arith.addf %27, %26 : vector<16x128xf32>
      %29 = arith.mulf %23, %28 : vector<16x128xf32>
      %30 = arith.mulf %18, %29 : vector<16x128xf32>
      %c0_21 = arith.constant 0 : index
      %c0_22 = arith.constant 0 : index
      %31 = vector.load %arg7[%c0_21, %c0_22] : memref<16x128xf32, #tpu.memory_space<vmem>>, vector<16x128xf32>
      tpu.vector_store %arg7[%c0_21, %c0_22], %30 {strides = array<i32>} : memref<16x128xf32, #tpu.memory_space<vmem>>, vector<16x128xf32>,
    } else {
    }
    return
  }
  func.func @transform_0(%arg0: i32, %arg1: i32, %arg2: i32) -> (i32, i32) {
    %c0_i32 = arith.constant 0 : i32
    return %arg0, %arg2 : i32, i32
  }
  func.func @transform_1(%arg0: i32, %arg1: i32, %arg2: i32) -> (i32, i32) {
    %c0_i32 = arith.constant 0 : i32
    return %arg2, %arg1 : i32, i32
  }
  func.func @transform_2(%arg0: i32, %arg1: i32, %arg2: i32) -> (i32, i32) {
    %c1_i32 = arith.constant 1 : i32
    %0 = arith.addi %c1_i32, %arg1 : i32
    %c0_i32 = arith.constant 0 : i32
    return %arg2, %0 : i32, i32
  }
  func.func @transform_3(%arg0: i32, %arg1: i32, %arg2: i32) -> (i32, i32) {
    %c0_i32 = arith.constant 0 : i32
    %c0_i32_0 = arith.constant 0 : i32
    return %c0_i32, %arg1 : i32, i32
  }
  func.func @transform_4(%arg0: i32, %arg1: i32, %arg2: i32) -> (i32, i32) {
    %c0_i32 = arith.constant 0 : i32
    return %arg0, %arg1 : i32, i32
  }
}

</mosaic_0001>

<bundles_post_ra>
// kernel: tpu_custom_call.1
= control target key start
LH: loop header
LB: loop body
LE: loop exit
PB: predicated region body
PF: predicated region fallthrough
CT: control target
= control target key end

     0   :  { %9 = vsyncpa [#allocation5], 0  ;;  %s635_s0 = inlined_call_operand.hbm [shape: f32[16,32], index: 0, kind: input, shape index: {}]   ;;  %s636_s1 = inlined_call_operand.hbm [shape: f32[32,256], index: 1, kind: input, shape index: {}]   ;;  %s637_s2 = inlined_call_operand.hbm [shape: f32[32,256], index: 2, kind: input, shape index: {}]   ;;  %s638_s3 = inlined_call_operand.hbm [shape: f32[2,128], index: 3, kind: input, shape index: {}]   ;;  %s639_s4 = inlined_call_operand.hbm [shape: f32[16,128], index: 4, kind: output, shape index: {}]  }
   0x1   :  { %10 = vsyncpa [#allocation8], 0 }
   0x2   :  { %11 = vsyncpa [#allocation11], 0 }
   0x3   :  { %12 = vsyncpa [#allocation6], 0  ;;  %s510_s15 = smov [#allocation7]   ;;  %s511_s17 = smov [#allocation4]  }
   0x4   :  { %s30_s16 = sshll.u32 %s510_s15, 4  ;;  %s18_s18 = sshll.u32 %s511_s17, 4  ;;  %s31_s16 = int_to_ptr.vmem [resolvable:$true] %s30_s16  ;;  %s19_s18 = int_to_ptr.vmem [resolvable:$true] %s18_s18 }
   0x5   :  { %s389_s21 = scalar_lea.hbm %s636_s1, 512  ;;  %s391_s26 = scalar_lea.hbm %s636_s1, 1024 }
   0x6   :  { %p390_p0 = scmp.ne.s32.totalorder %s636_s1, %s389_s21  ;;  %p392_p1 = scmp.lt.u32.totalorder %s391_s26, %s389_s21 }
   0x7   :  { %p393_p2 = scmp.lt.u32.totalorder %s389_s21, %s636_s1 }
   0x9   :  { %p394_p3 = por %p393_p2, %p392_p1 }
   0xb   :  { %p395_p4 = pnand %p394_p3, %p390_p0 }
   0xd   :  { %398 = shalt.err (!%p395_p4)
}
   0xe   :  { %s399_s29 = scalar_lea.vmem %s31_s16, 512  ;;  %p404_p6 = scmp.lt.s32.totalorder %s31_s16, %s31_s16 }
   0xf   :  { %p400_p5 = scmp.ne.s32.totalorder %s31_s16, %s399_s29  ;;  %p405_p7 = scmp.lt.s32.totalorder %s399_s29, %s399_s29 }
  0x11   :  { %p406_p8 = por %p405_p7, %p404_p6 }
  0x13   :  { %p407_p9 = pnand %p406_p8, %p400_p5 }
  0x15   :  { %410 = shalt.err (!%p407_p9)
}
  0x16   :  { %s512_s30 = smov 256   ;;  %s513_s5 = smov 128  }
  0x17   :  { %s514_s6 = smov 8   ;;  %s564_s11 = scalar_lea.hbm %s637_s2, 128 }
  0x18   :  { %36 = dma.hbm_to_vmem [thread:$0]  %s636_s1, 512, %s31_s16, [#allocation8], %s512_s30, %s513_s5, %s514_s6  }
  0x19   :  { %s411_s14 = scalar_lea.hbm %s635_s0, 256 }
  0x1a   :  { %p412_p10 = scmp.ne.s32.totalorder %s635_s0, %s411_s14  ;;  %p415_p11 = scmp.lt.u32.totalorder %s411_s14, %s635_s0 }
  0x1c   :  { %p417_p12 = pnand %p415_p11, %p412_p10 }
  0x1e   :  { %420 = shalt.err (!%p417_p12)
}
  0x1f   :  { %s421_s1 = scalar_lea.vmem %s19_s18, 256  ;;  %p426_p0 = scmp.lt.s32.totalorder %s19_s18, %s19_s18 }
  0x20   :  { %p422_p13 = scmp.ne.s32.totalorder %s19_s18, %s421_s1  ;;  %p427_p1 = scmp.lt.s32.totalorder %s421_s1, %s421_s1 }
  0x22   :  { %p428_p2 = por %p427_p1, %p426_p0 }
  0x24   :  { %p429_p3 = pnand %p428_p2, %p422_p13 }
  0x26   :  { %432 = shalt.err (!%p429_p3)
}
  0x27   :  { %24 = dma.hbm_to_vmem [thread:$0]  %s635_s0, 256, %s19_s18, [#allocation5], %s513_s5, %s513_s5, %s514_s6  }
  0x28   :  { %s515_s22 = smov [#allocation9]   ;;  %s516_s24 = smov [#allocation10]  }
  0x29   :  { %s45_s23 = sshll.u32 %s515_s22, 4  ;;  %s58_s25 = sshll.u32 %s516_s24, 4  ;;  %s46_s23 = int_to_ptr.vmem [resolvable:$true] %s45_s23  ;;  %s581_s25 = int_to_ptr.vmem [resolvable:$true] %s58_s25 }
  0x2a   :  { %s457_s28 = scalar_lea.hbm %s637_s2, 640  ;;  %s435_s8 = scalar_lea.hbm %s637_s2, 1024 }
  0x2b   :  { %p434_p4 = scmp.ne.s32.totalorder %s564_s11, %s457_s28  ;;  %p436_p5 = scmp.lt.u32.totalorder %s564_s11, %s637_s2 }
  0x2c   :  { %p437_p6 = scmp.lt.u32.totalorder %s435_s8, %s457_s28  ;;  %p439_p8 = scmp.lt.u32.totalorder %s457_s28, %s564_s11 }
  0x2e   :  { %p438_p7 = por %p437_p6, %p436_p5 }
  0x30   :  { %p440_p9 = por %p439_p8, %p438_p7 }
  0x32   :  { %p441_p10 = pnand %p440_p9, %p434_p4 }
  0x34   :  { %444 = shalt.err (!%p441_p10)
}
  0x35   :  { %s445_s0 = scalar_lea.vmem %s46_s23, 512  ;;  %p450_p12 = scmp.lt.s32.totalorder %s46_s23, %s46_s23 }
  0x36   :  { %p446_p11 = scmp.ne.s32.totalorder %s46_s23, %s445_s0  ;;  %p451_p13 = scmp.lt.s32.totalorder %s445_s0, %s445_s0 }
  0x38   :  { %p452_p0 = por %p451_p13, %p450_p12 }
  0x3a   :  { %p453_p1 = pnand %p452_p0, %p446_p11 }
  0x3c   :  { %456 = shalt.err (!%p453_p1)
}
  0x3d   :  { %51 = dma.hbm_to_vmem [thread:$0]  %s564_s11, 512, %s46_s23, [#allocation8], %s512_s30, %s513_s5, %s514_s6  }
  0x3e   :  { %s458_s12 = scalar_lea.hbm %s638_s3, 32 }
  0x3f   :  { %p459_p2 = scmp.ne.s32.totalorder %s638_s3, %s458_s12  ;;  %p462_p3 = scmp.lt.u32.totalorder %s458_s12, %s638_s3 }
  0x41   :  { %p464_p4 = pnand %p462_p3, %p459_p2 }
  0x43   :  { %467 = shalt.err (!%p464_p4)
}
  0x44   :  { %s468_s19 = scalar_lea.vmem %s581_s25, 32  ;;  %p473_p6 = scmp.lt.s32.totalorder %s581_s25, %s581_s25 }
  0x45   :  { %p469_p5 = scmp.ne.s32.totalorder %s581_s25, %s468_s19  ;;  %p474_p7 = scmp.lt.s32.totalorder %s468_s19, %s468_s19 }
  0x47   :  { %p475_p8 = por %p474_p7, %p473_p6 }
  0x49   :  { %p476_p9 = pnand %p475_p8, %p469_p5 }
  0x4b   :  { %479 = shalt.err (!%p476_p9)
}
  0x4c   :  { %61 = dma.hbm_to_vmem [thread:$0]  %s638_s3, 32, %s581_s25, [#allocation11]  }
  0x4d   :  { %502 = dma.done.wait [#allocation5], 256  }
  0x4e   :  { %503 = vsyncadd [#allocation5], 4294967040 }
  0x4f   :  { %504 = dma.done.wait [#allocation8], 1024  }
  0x50   :  { %505 = vsyncadd [#allocation8], 4294966272 }
  0x51   :  { %506 = dma.done.wait [#allocation11], 32  }
  0x52   :  { %507 = vsyncadd [#allocation11], 4294967264  ;;  %vm81_vm0 = vcmask 261120   ;;  %v163_v0 = vld [vmem:[#allocation9] sm:$0xff]  ;;  %v164_v1 = vld [vmem:[#allocation9 + $0x8] sm:$0xff]  ;;  %s517_s3 = smov [#allocation12]  }
  0x53   :  { %v165_v2 = vld [vmem:[#allocation9 + $0x10] sm:$0xff]  ;;  %v369_v3 = vpack.c.bf16 %v164_v1, %v163_v0  ;;  %v166_v4 = vld [vmem:[#allocation9 + $0x18] sm:$0xff]  ;;  %v77_v7 = vld [vmem:[#allocation7] sm:$0xff]  ;;  %s306_s20 = sshll.u32 %s517_s3, 4  ;;  %s307_s20 = int_to_ptr.vmem [resolvable:$true] %s306_s20 }
  0x54   :  { %v75_v5 = vld [vmem:[#allocation4] sm:$0xff]  ;;  %v373_v6 = vpack.c.bf16 %v166_v4, %v165_v2  ;;  %v78_v8 = vld [vmem:[#allocation7 + $0x8] sm:$0xff]  ;;  %v80_v11 = vld [vmem:[#allocation7 + $0x18] sm:$0xff]  ;;  %s480_s1 = scalar_lea.vmem %s307_s20, 256  ;;  %p485_p11 = scmp.lt.s32.totalorder %s307_s20, %s307_s20 }
  0x55   :  { %358 = vmatprep.mubr.msk.f32.mxu1 %vm81_vm0, %v75_v5  ;;  %v79_v9 = vld [vmem:[#allocation7 + $0x10] sm:$0xff]  ;;  %347 = vmatprep.mubr.msk.f32.mxu0 %vm81_vm0, %v75_v5  ;;  %v361_v10 = vpack.c.bf16 %v78_v8, %v77_v7  ;;  %v76_v13 = vld [vmem:[#allocation4 + $0x8] sm:$0xff]  ;;  %v326_v14 = vld [vmem:[#allocation10 + $0x1] ss:$0 sm:$0xff]  ;;  %p481_p10 = scmp.ne.s32.totalorder %s307_s20, %s480_s1  ;;  %p486_p12 = scmp.lt.s32.totalorder %s480_s1, %s480_s1 }
  0x56   :  { %370 = vmatprep.subr.bf16.mxu1 %v369_v3  ;;  %v365_v12 = vpack.c.bf16 %v80_v11, %v79_v9  ;;  %v325_v23 = vld [vmem:[#allocation10] ss:$0 sm:$0xff] }
  0x57   :  { %372 = vmatpush3.bf16.msra.mxu1 %v369_v3  ;;  %362 = vmatprep.subr.bf16.mxu0 %v361_v10  ;;  %p487_p13 = por %p486_p12, %p485_p11 }
  0x58   :  { %374 = vmatprep.subr.bf16.mxu1 %v373_v6  ;;  %364 = vmatpush3.bf16.msra.mxu0 %v361_v10 }
  0x59   :  { %366 = vmatprep.subr.bf16.mxu0 %v365_v12  ;;  %p488_p0 = pnand %p487_p13, %p481_p10 }
  0x5b   :  { %376 = vmatpush3.bf16.msra.mxu1 %v373_v6 }
  0x5c   :  { %368 = vmatpush3.bf16.msra.mxu0 %v365_v12 }
  0x5e   :  { %359 = vmatmul.mubr.msk.f32.vlgmr.msra.gmra.mrb[0].mxu1 %vm81_vm0, %v76_v13 }
  0x5f   :  { %348 = vmatmul.mubr.msk.f32.vlgmr.msra.gmra.mrb[0].mxu0 %vm81_vm0, %v76_v13 }
 0x131   :  { %v360_v15 = vpop.f32.mrb[0].mxu1 }
 0x132   :  { %v286_v16 = vadd.f32 %v360_v15, %v326_v14  ;;  %v233_v17 = vpop.f32.mrb[1].mxu1  ;;  %v349_v19 = vpop.f32.mrb[0].mxu0 }
 0x133   :  { %v285_v18 = vadd.f32 %v326_v14, %v233_v17  ;;  %v154_v21 = vpop.f32.mrb[1].mxu0  ;;  %v278_v28 = vadd.f32 %v349_v19, %v325_v23 }
 0x134   :  { %v290_v20 = vmul.f32 0.70710677, %v286_v16  ;;  %v288_v26 = vmul.f32 0.5, %v286_v16  ;;  %v277_v31 = vadd.f32 %v325_v23, %v154_v21 }
 0x135   :  { %v289_v22 = vmul.f32 0.70710677, %v285_v18  ;;  %v287_v29 = vmul.f32 0.5, %v285_v18 }
 0x136   :  { %385 = verf.f32 %v290_v20 }
 0x137   :  { %387 = verf.f32 %v289_v22 }
 0x140   :  { %v386_v24 = vpop.eup %385 }
 0x141   :  { %v388_v25 = vpop.eup %387  ;;  %v294_v27 = vadd.f32 1.0, %v386_v24 }
 0x142   :  { %v293_v30 = vadd.f32 1.0, %v388_v25 }
 0x143   :  { %v296_v32 = vmul.f32 %v294_v27, %v288_v26 }
 0x144   :  { %v295_v33 = vmul.f32 %v293_v30, %v287_v29 }
 0x145   :  { %v298_v34 = vmul.f32 %v296_v32, %v278_v28 }
 0x146   :  { %v297_v35 = vmul.f32 %v295_v33, %v277_v31 }
 0x147   :  { %300 = vst [vmem:[#allocation12 + $0x8] sm:$0xff] %v298_v34 }
 0x148   :  { %299 = vst [vmem:[#allocation12] sm:$0xff] %v297_v35 }
 0x149   :  { %491 = shalt.err (!%p488_p0)
}
 0x14a   :  { %s492_s22 = scalar_lea.hbm %s639_s4, 256 }
 0x14b   :  { %p493_p1 = scmp.ne.s32.totalorder %s639_s4, %s492_s22  ;;  %p496_p2 = scmp.lt.u32.totalorder %s492_s22, %s639_s4 }
 0x14d   :  { %p498_p3 = pnand %p496_p2, %p493_p1 }
 0x14f   :  { %501 = shalt.err (!%p498_p3)
}
 0x150   :  { %312 = dma.vmem_to_hbm [thread:$0]  %s307_s20, 256, %s639_s4, [#allocation6], %s513_s5, %s513_s5, %s514_s6  }
 0x151   :  { %508 = dma.done.wait [#allocation6], 256  }
 0x152   :  { %509 = vsyncadd [#allocation6], 4294967040 }
 0x153   :  { %316 = vsyncpa [#allocation5], 1 }
 0x154   :  { %317 = vsyncpa [#allocation8], 1 }
 0x155   :  { %318 = vsyncpa [#allocation11], 1 }
 0x156   :  { %319 = vsyncpa [#allocation6], 1 }

</bundles_post_ra>
